<compile_context>
chip_gen: v5e
topology: v5e:2x2
jax: 0.10.0
libtpu: 0.0.40
codegen_flags: <defaults>
</compile_context>

<pallas_src>
import functools

import jax
import jax.numpy as jnp
from jax.experimental import pallas as pl
from jax.experimental.pallas import tpu as pltpu


# ----------------------------- Pallas kernel ------------------------------ #
def _linear_kernel(x_ref, w_ref, b_ref, o_ref):
    # x_ref: (TILE, Kp) f32   w_ref: (Kp, Np) compute dtype   b_ref: (1, Np) f32
    # o_ref: (TILE, Np) out dtype
    # In-kernel cast (instead of a separate XLA cast pass over HBM); f32
    # accumulation on the MXU via preferred_element_type.
    x = x_ref[...].astype(w_ref.dtype)
    acc = jnp.dot(x, w_ref[...], preferred_element_type=jnp.float32)
    o_ref[...] = (acc + b_ref[...]).astype(o_ref.dtype)


def _linear_pallas_call(x_in, w_in, b_in, *, tile_rows, out_dtype):
    """(Mr, Kp) f32 @ (Kp, Np) + (1, Np) -> (Mr, Np) out_dtype on the MXU."""
    Mr, Kp = x_in.shape
    Kw, Np = w_in.shape
    assert Kp == Kw

    # Row tile: as large as possible (amortizes per-grid-step overhead), but
    # keep >= 2 grid blocks when there are enough rows so the "parallel" axis
    # can be sharded across both v7x TensorCores.
    tile_r = min(tile_rows, Mr)
    if Mr >= 16:
        half = (((Mr + 1) // 2) + 7) // 8 * 8          # ceil(Mr/2), sublane-aligned
        tile_r = min(tile_r, half)
    if tile_r < Mr:
        tile_r = max(8, (tile_r // 8) * 8)             # sublane-aligned when tiling
    grid_r = pl.cdiv(Mr, tile_r)

    out_itemsize = jnp.dtype(out_dtype).itemsize
    # Double-buffered footprint: pipelined x/out tiles + tiny resident W/bias.
    # Raise the scoped VMEM limit explicitly (v5e default is 16 MiB); cap at
    # 48 MiB to stay inside v7x's 64 MiB physical VMEM.
    vmem_need = (2 * tile_r * (Kp * x_in.dtype.itemsize + Np * out_itemsize)
                 + 2 * (Kp * Np * w_in.dtype.itemsize + Np * b_in.dtype.itemsize)
                 + (1 << 20))
    vmem_limit = int(min(max(vmem_need, 32 << 20), 48 << 20))

    bytes_accessed = (x_in.size * x_in.dtype.itemsize
                      + w_in.size * w_in.dtype.itemsize
                      + b_in.size * b_in.dtype.itemsize
                      + Mr * Np * out_itemsize)

    return pl.pallas_call(
        _linear_kernel,
        out_shape=jax.ShapeDtypeStruct((Mr, Np), out_dtype),
        grid=(grid_r,),
        in_specs=[
            pl.BlockSpec((tile_r, Kp), lambda i: (i, 0)),  # activations: row-tiled
            pl.BlockSpec((Kp, Np), lambda i: (0, 0)),      # weight: VMEM-resident
            pl.BlockSpec((1, Np), lambda i: (0, 0)),       # bias: VMEM-resident
        ],
        out_specs=pl.BlockSpec((tile_r, Np), lambda i: (i, 0)),
        compiler_params=pltpu.CompilerParams(
            dimension_semantics=("parallel",),   # independent rows -> v7x megacore
            vmem_limit_bytes=vmem_limit,
        ),
        cost_estimate=pl.CostEstimate(
            flops=2 * Mr * Kp * Np,
            transcendentals=0,
            bytes_accessed=bytes_accessed,
        ),
    )(x_in, w_in, b_in)


# ------------------------- packing / jitted forward ------------------------ #
def _pack_linear_params(w, b, g, compute_dtype):
    """Expand (K, N) weight to block-diagonal (K*g, N*g) so that g consecutive
    input rows packed into one lane-dense row yield g packed output rows."""
    K, N = w.shape
    wd = w.astype(compute_dtype)
    bf = b.astype(jnp.float32)
    if g > 1:
        w_packed = jnp.kron(jnp.eye(g, dtype=wd.dtype), wd)   # (K*g, N*g)
        b_packed = jnp.tile(bf, g).reshape(1, N * g)
    else:
        w_packed = wd
        b_packed = bf.reshape(1, N)
    return w_packed, b_packed


@functools.partial(jax.jit,
                   static_argnames=("g", "n_out", "tile_rows", "out_dtype"))
def _packed_linear_forward(x, w_packed, b_packed, *, g, n_out, tile_rows,
                           out_dtype):
    B, T, F = x.shape
    Mr = (B * T) // g
    # Row-major contiguous reshapes: pure metadata (bitcast), no HBM copy.
    x_in = x.reshape(Mr, F * g)
    y2d = _linear_pallas_call(x_in, w_packed, b_packed,
                              tile_rows=tile_rows, out_dtype=out_dtype)
    return y2d.reshape(B, T, n_out)


# --------------------------- module realization ---------------------------- #
class TimeSeriesRegressorPallas:
    """Concrete Pallas realization of the abstract TimeSeriesRegressor."""

    def __init__(self, input_size, output_size, key,
                 compute_dtype=jnp.bfloat16, out_dtype=jnp.float32,
                 tile_rows=4096):
        self.input_size = input_size
        self.output_size = output_size
        # bf16 matmul is MXU-native and halves weight read traffic; pass
        # jnp.float32 for exact nn.Linear math (documented accuracy tradeoff).
        self.compute_dtype = compute_dtype
        self.out_dtype = out_dtype
        self.tile_rows = tile_rows

        kw, kb = jax.random.split(key)
        bound = 1.0 / (input_size ** 0.5)    # torch.nn.Linear-style init
        self.weight = jax.random.uniform(
            kw, (input_size, output_size), jnp.float32, -bound, bound)
        self.bias = jax.random.uniform(
            kb, (output_size,), jnp.float32, -bound, bound)

        # Full lane-density packing factor: g consecutive rows share one
        # 128-lane output row (output_size * g == 128).  Power of two.
        if output_size < 128 and 128 % output_size == 0:
            self._g_full = 128 // output_size
        else:
            self._g_full = 1   # already lane-dense (or not packable)
        # Precompute packed block-diagonal weight / tiled bias once (~64 KiB).
        self._packed = {self._g_full: _pack_linear_params(
            self.weight, self.bias, self._g_full, compute_dtype)}

    def _params_for(self, g):
        if g not in self._packed:
            self._packed[g] = _pack_linear_params(
                self.weight, self.bias, g, self.compute_dtype)
        return self._packed[g]

    def get_starting_states(self, batch_size, y=None):
        return jnp.zeros((batch_size, self.output_size), jnp.float32)

    def forward(self, x, states):
        # x: (batch, seq, input_size) -> y: (batch, seq, output_size)
        B, T, F = x.shape
        assert F == self.input_size
        M = B * T
        # Shrink the (power-of-two) packing factor until it divides M instead
        # of padding: avoids the jnp.pad + [:M] slice HBM copies entirely.
        g = self._g_full
        while g > 1 and M % g != 0:
            g //= 2
        w_packed, b_packed = self._params_for(g)
        y = _packed_linear_forward(
            x, w_packed, b_packed, g=g, n_out=self.output_size,
            tile_rows=self.tile_rows, out_dtype=self.out_dtype)
        return y, states


# --------------------------------- main ------------------------------------ #
if __name__ == "__main__":
    key = jax.random.PRNGKey(0)
    k_x, k_p = jax.random.split(key)

    batch, seq, input_size, output_size = 2, 8, 16, 8
    x = jax.random.normal(k_x, (batch, seq, input_size), jnp.float32)

    model = TimeSeriesRegressorPallas(input_size, output_size, k_p)
    states = model.get_starting_states(batch)

    y, states_out = model.forward(x, states)
    y = jax.block_until_ready(y)
    assert y.shape == (batch, seq, output_size)
    assert y.dtype == jnp.float32

    # Reference 1: same bf16-rounded operands, f32 accumulate (tight tolerance).
    xb = x.reshape(-1, input_size).astype(jnp.bfloat16).astype(jnp.float32)
    wb = model.weight.astype(jnp.bfloat16).astype(jnp.float32)
    ref_bf16 = (xb @ wb + model.bias).reshape(batch, seq, output_size)
    assert jnp.allclose(y, ref_bf16, atol=2e-3, rtol=2e-3)

    # Reference 2: pure f32 math (loose tolerance: bf16 operand rounding).
    ref_f32 = (x.reshape(-1, input_size) @ model.weight
               + model.bias).reshape(batch, seq, output_size)
    assert jnp.allclose(y, ref_f32, atol=5e-2, rtol=5e-2)

    print("KERNEL_OK")
</pallas_src>

<mosaic_0001>
module attributes {stable_mosaic.version = 11 : i64} {
  func.func @_linear_kernel(%arg0: i32, %arg1: memref<1x256xf32, #tpu.memory_space<vmem>>, %arg2: memref<256x128xbf16, #tpu.memory_space<vmem>>, %arg3: memref<1x128xf32, #tpu.memory_space<vmem>>, %arg4: memref<1x128xf32, #tpu.memory_space<vmem>>) attributes {dimension_semantics = [#tpu.dimension_semantics<parallel>], iteration_bounds = array<i64: 1>, scalar_prefetch = 0 : i64, scratch_operands = 0 : i64, tpu.core_type = #tpu.core_type<tc>, window_params = [{transform_indices = @transform_0, window_bounds = array<i64: 1, 256>}, {pipeline_mode = #tpu.pipeline_mode<synchronous>, transform_indices = @transform_1, window_bounds = array<i64: 256, 128>}, {pipeline_mode = #tpu.pipeline_mode<synchronous>, transform_indices = @transform_2, window_bounds = array<i64: 1, 128>}, {transform_indices = @transform_3, window_bounds = array<i64: 1, 128>}]} {
    %c0 = arith.constant 0 : index
    %c0_0 = arith.constant 0 : index
    %0 = vector.load %arg1[%c0, %c0_0] : memref<1x256xf32, #tpu.memory_space<vmem>>, vector<1x256xf32>
    %1 = arith.truncf %0 : vector<1x256xf32> to vector<1x256xbf16>
    %c0_1 = arith.constant 0 : index
    %c0_2 = arith.constant 0 : index
    %2 = vector.load %arg2[%c0_1, %c0_2] : memref<256x128xbf16, #tpu.memory_space<vmem>>, vector<256x128xbf16>
    %cst = arith.constant dense<0.000000e+00> : vector<1x128xf32>
    %3 = tpu.matmul %1, %2, %cst {dimension_numbers = #tpu.dot_dimension_numbers<[1], [0], [0], [1], [0, 0, 1, 1], [], []>} : vector<1x256xbf16>, vector<256x128xbf16>, vector<1x128xf32> -> vector<1x128xf32>
    %c0_3 = arith.constant 0 : index
    %c0_4 = arith.constant 0 : index
    %4 = vector.load %arg3[%c0_3, %c0_4] : memref<1x128xf32, #tpu.memory_space<vmem>>, vector<1x128xf32>
    %5 = arith.addf %3, %4 : vector<1x128xf32>
    %c0_5 = arith.constant 0 : index
    %c0_6 = arith.constant 0 : index
    %6 = vector.load %arg4[%c0_5, %c0_6] : memref<1x128xf32, #tpu.memory_space<vmem>>, vector<1x128xf32>
    tpu.vector_store %arg4[%c0_5, %c0_6], %5 {strides = array<i32>} : memref<1x128xf32, #tpu.memory_space<vmem>>, vector<1x128xf32>,
    return
  }
  func.func @transform_0(%arg0: i32) -> (i32, i32) {
    %c0_i32 = arith.constant 0 : i32
    %c0_i32_0 = arith.constant 0 : i32
    return %arg0, %c0_i32 : i32, i32
  }
  func.func @transform_1(%arg0: i32) -> (i32, i32) {
    %c0_i32 = arith.constant 0 : i32
    %c0_i32_0 = arith.constant 0 : i32
    %c0_i32_1 = arith.constant 0 : i32
    return %c0_i32, %c0_i32_0 : i32, i32
  }
  func.func @transform_2(%arg0: i32) -> (i32, i32) {
    %c0_i32 = arith.constant 0 : i32
    %c0_i32_0 = arith.constant 0 : i32
    %c0_i32_1 = arith.constant 0 : i32
    return %c0_i32, %c0_i32_0 : i32, i32
  }
  func.func @transform_3(%arg0: i32) -> (i32, i32) {
    %c0_i32 = arith.constant 0 : i32
    %c0_i32_0 = arith.constant 0 : i32
    return %arg0, %c0_i32 : i32, i32
  }
}

</mosaic_0001>

<bundles_post_ra>
// kernel: _packed_linear_forward.1
= control target key start
LH: loop header
LB: loop body
LE: loop exit
PB: predicated region body
PF: predicated region fallthrough
CT: control target
= control target key end

     0   :  { %8 = vsyncpa [#allocation3], 0  ;;  %s308_s15 = smov [#allocation2]   ;;  %s309_s17 = smov 64   ;;  %s343_s0 = inlined_call_operand.vmem [shape: f32[1,256], index: 0, kind: input, shape index: {}]   ;;  %s344_s1 = inlined_call_operand.hbm [shape: bf16[256,128], index: 1, kind: input, shape index: {}]   ;;  %s345_s2 = inlined_call_operand.vmem [shape: f32[1,128], index: 2, kind: input, shape index: {}]   ;;  %s346_s3 = inlined_call_operand.vmem [shape: f32[1,128], index: 3, kind: output, shape index: {}]  }
   0x1   :  { %s15_s14 = sshll.u32 %s344_s1, 4  ;;  %s17_s16 = sshll.u32 %s308_s15, 4  ;;  %s16_s14 = int_to_ptr.hbm [resolvable:$true] %s15_s14  ;;  %s18_s16 = int_to_ptr.vmem [resolvable:$true] %s17_s16 }
   0x2   :  { %s310_s18 = smov 4  }
   0x3   :  { %23 = dma.hbm_to_vmem [thread:$0]  %s16_s14, 2048, %s18_s16, [#allocation3], %s309_s17, %s309_s17, %s310_s18  }
   0x4   :  { %306 = dma.done.wait [#allocation3], 2048  }
   0x5   :  { %307 = vsyncadd [#allocation3], 4294965248  ;;  %v270_v0 = vld [vmem:[#allocation2 + $0x38] sm:$0xff]  ;;  %v269_v2 = vld [vmem:[#allocation2 + $0x30] sm:$0xff] }
   0x6   :  { %v278_v1 = vld [vmem:[#allocation2 + $0x78] sm:$0xff]  ;;  %167 = vmatpush.bf16.msra.mxu0 %v270_v0  ;;  %v277_v3 = vld [vmem:[#allocation2 + $0x70] sm:$0xff]  ;;  %v268_v4 = vld [vmem:[#allocation2 + $0x28] sm:$0xff] }
   0x7   :  { %180 = vmatpush.bf16.msra.mxu1 %v278_v1  ;;  %v276_v5 = vld [vmem:[#allocation2 + $0x68] sm:$0xff]  ;;  %v267_v6 = vld [vmem:[#allocation2 + $0x20] sm:$0xff]  ;;  %v266_v8 = vld [vmem:[#allocation2 + $0x18] sm:$0xff] }
   0x8   :  { %v275_v7 = vld [vmem:[#allocation2 + $0x60] sm:$0xff]  ;;  %v274_v9 = vld [vmem:[#allocation2 + $0x58] sm:$0xff]  ;;  %v265_v10 = vld [vmem:[#allocation2 + $0x10] sm:$0xff] }
   0x9   :  { %v273_v11 = vld [vmem:[#allocation2 + $0x50] sm:$0xff]  ;;  %v264_v12 = vld [vmem:[#allocation2 + $0x8] sm:$0xff]  ;;  %v30_v14 = vld [vmem:[%s343_s0] sm:$0x3] }
   0xa   :  { %168 = vmatpush.bf16.msra.mxu0 %v269_v2  ;;  %v272_v13 = vld [vmem:[#allocation2 + $0x48] sm:$0xff]  ;;  %v32_v15 = vperm.slane %v30_v14, 0  ;;  %v33_v16 = vperm.slane %v30_v14, 1  ;;  %v263_v17 = vld [vmem:[#allocation2] sm:$0xff] }
   0xb   :  { %181 = vmatpush.bf16.msra.mxu1 %v277_v3  ;;  %v271_v18 = vld [vmem:[#allocation2 + $0x40] sm:$0xff] }
   0xc   :  { %v36_v19 = vpack.c.bf16 %v32_v15, %v32_v15  ;;  %v37_v20 = vpack.c.bf16 %v33_v16, %v33_v16  ;;  %v70_v21 = vld [vmem:[%s345_s2] sm:$0x1] }
   0xe   :  { %169 = vmatpush.bf16.msra.mxu0 %v268_v4 }
   0xf   :  { %182 = vmatpush.bf16.msra.mxu1 %v276_v5 }
  0x12   :  { %170 = vmatpush.bf16.msra.mxu0 %v267_v6 }
  0x13   :  { %183 = vmatpush.bf16.msra.mxu1 %v275_v7 }
  0x16   :  { %171 = vmatpush.bf16.msra.mxu0 %v266_v8 }
  0x17   :  { %184 = vmatpush.bf16.msra.mxu1 %v274_v9 }
  0x1a   :  { %172 = vmatpush.bf16.msra.mxu0 %v265_v10 }
  0x1b   :  { %185 = vmatpush.bf16.msra.mxu1 %v273_v11 }
  0x1e   :  { %173 = vmatpush.bf16.msra.mxu0 %v264_v12 }
  0x1f   :  { %186 = vmatpush.bf16.msra.mxu1 %v272_v13 }
  0x22   :  { %174 = vmatpush.bf16.msra.mxu0 %v263_v17 }
  0x23   :  { %187 = vmatpush.bf16.msra.mxu1 %v271_v18 }
  0x25   :  { %175 = vmatmul.bf16.vlgmr.msra.gmra.mxu0 %v36_v19 }
  0x26   :  { %188 = vmatmul.bf16.vlgmr.msra.gmra.mxu1 %v37_v20 }
  0xa2   :  { %v176_v22 = vpop.f32.mrf.mxu0 }
  0xa3   :  { %v189_v23 = vpop.f32.mrf.mxu1  ;;  %v177_v24 = vadd.f32 %v176_v22, %v70_v21 }
  0xa5   :  { %v190_v25 = vadd.f32 %v189_v23, %v177_v24 }
  0xa7   :  { %193 = vst [vmem:[%s346_s3] sm:$0x1] %v190_v25 }
  0xaa   :  { %v178_v26 = vpop.f32.mrf.mxu0 }
  0xab   :  { %v191_v27 = vpop.f32.mrf.mxu1 }
  0xac   :  { %198 = vsyncpa [#allocation3], 1 }

</bundles_post_ra>
